<compile_context>
chip_gen: v7x
topology: tpu7x:2x2x1
jax: 0.10.0
libtpu: 0.0.40
codegen_flags: <defaults>
</compile_context>

<pallas_src>
import itertools
from functools import partial

import numpy as np
import jax
import jax.numpy as jnp
from jax.experimental import pallas as pl
from jax.experimental.pallas import tpu as pltpu


# ----------------------------------------------------------------------------
# Fused Pallas kernel: qkv -> attention -> hardswish -> proj, one batch per step
# ----------------------------------------------------------------------------
def _levit_attn_kernel(
    x_ref,        # (1, N, C)
    wqkv_ref,     # (C, H)      H = 2*nh*key_dim + nh*d, packed [q | k | v]
    bqkv_ref,     # (1, H)
    ab_ref,       # (nh, N, N)  attention bias table
    wproj_ref,    # (dh, dim)
    bproj_ref,    # (1, dim)
    o_ref,        # (1, N, dim)
    attn_ref,     # VMEM scratch (N, dh) -- heads packed on the lane axis
    *,
    num_heads,
    key_dim,
    d,
    scale,
):
    x = x_ref[0]  # (N, C)

    # qkv projection (BN folded into weights); packed as [q_all | k_all | v_all]
    qkv = (
        jnp.dot(x, wqkv_ref[...], preferred_element_type=jnp.float32)
        + bqkv_ref[...]
    )
    nh_kd = num_heads * key_dim
    q = qkv[:, :nh_kd] * scale          # fold scale into q (N*key_dim elems)
    k = qkv[:, nh_kd : 2 * nh_kd]
    v = qkv[:, 2 * nh_kd :]

    # per-head attention; static Python loop (num_heads is small & static)
    for h in range(num_heads):
        qh = q[:, h * key_dim : (h + 1) * key_dim]          # (N, key_dim)
        kh = k[:, h * key_dim : (h + 1) * key_dim]          # (N, key_dim)
        vh = v[:, h * d : (h + 1) * d]                      # (N, d)

        s = jnp.dot(qh, kh.T, preferred_element_type=jnp.float32) + ab_ref[h]
        s = s - jnp.max(s, axis=-1, keepdims=True)
        p = jnp.exp(s)
        denom = jnp.sum(p, axis=-1, keepdims=True)
        p = p * pl.reciprocal(denom, approx=True)           # EUP, not VALU divide

        # write this head's output into its lane slice of the packed (N, dh) buffer
        attn_ref[:, h * d : (h + 1) * d] = jnp.dot(
            p, vh, preferred_element_type=jnp.float32
        )

    # proj = Hardswish -> LinearNorm (BN folded), fused in the same kernel
    o = attn_ref[...]                                       # (N, dh)
    o = o * (jnp.clip(o + 3.0, 0.0, 6.0) * (1.0 / 6.0))
    y = (
        jnp.dot(o, wproj_ref[...], preferred_element_type=jnp.float32)
        + bproj_ref[...]
    )
    o_ref[0] = y.astype(o_ref.dtype)


def levit_attention_fused(x, w_qkv, b_qkv, ab, w_proj, b_proj, *,
                          num_heads, key_dim, d, scale):
    """x: (B, N, C); w_qkv: (C, H) packed [q|k|v]; ab: (nh, N, N); w_proj: (dh, dim)."""
    B, N, C = x.shape
    H = w_qkv.shape[1]
    dh = num_heads * d
    dim_out = w_proj.shape[1]

    kernel = partial(
        _levit_attn_kernel,
        num_heads=num_heads,
        key_dim=key_dim,
        d=d,
        scale=scale,
    )

    return pl.pallas_call(
        kernel,
        out_shape=jax.ShapeDtypeStruct((B, N, dim_out), x.dtype),
        grid=(B,),
        in_specs=[
            pl.BlockSpec((1, N, C), lambda b: (b, 0, 0)),          # x: per-batch tile
            pl.BlockSpec((C, H), lambda b: (0, 0)),                # resident weights
            pl.BlockSpec((1, H), lambda b: (0, 0)),
            pl.BlockSpec((num_heads, N, N), lambda b: (0, 0, 0)),  # resident bias table
            pl.BlockSpec((dh, dim_out), lambda b: (0, 0)),
            pl.BlockSpec((1, dim_out), lambda b: (0, 0)),
        ],
        out_specs=pl.BlockSpec((1, N, dim_out), lambda b: (b, 0, 0)),
        scratch_shapes=[pltpu.VMEM((N, dh), jnp.float32)],
        compiler_params=pltpu.CompilerParams(
            dimension_semantics=("parallel",),
        ),
    )(x, w_qkv, b_qkv.reshape(1, H), ab, w_proj, b_proj.reshape(1, dim_out))


# ----------------------------------------------------------------------------
# Module (parameter setup + BN folding + head-packing permutation)
# ----------------------------------------------------------------------------
def _fold_bn(W, gamma, beta, mean, var, eps=1e-5):
    """Fold eval-mode BatchNorm1d into Linear (W is (out, in)). Returns (in,out), (out,)."""
    s = gamma / jnp.sqrt(var + eps)
    w_eff = (W * s[:, None]).T
    b_eff = beta - mean * s
    return w_eff, b_eff


class LevitAttention:
    def __init__(self, dim, key_dim, num_heads=8, attn_ratio=4, resolution=14, seed=0):
        self.dim = dim
        self.key_dim = key_dim
        self.num_heads = num_heads
        self.scale = key_dim ** (-0.5)
        self.nh_kd = key_dim * num_heads
        self.d = int(attn_ratio * key_dim)
        self.dh = self.d * num_heads
        h = self.dh + self.nh_kd * 2

        ks = jax.random.split(jax.random.PRNGKey(seed), 11)

        # qkv LinearNorm params (Linear(dim, h, bias=False) + BatchNorm1d(h))
        w_qkv = jax.random.normal(ks[0], (h, dim), jnp.float32) * 0.05
        g_qkv = jax.random.uniform(ks[1], (h,), jnp.float32, 0.5, 1.5)
        b_qkv = jax.random.normal(ks[2], (h,), jnp.float32) * 0.1
        m_qkv = jax.random.normal(ks[3], (h,), jnp.float32) * 0.1
        v_qkv = jax.random.uniform(ks[4], (h,), jnp.float32, 0.5, 1.5)
        # original (PyTorch interleaved per-head) layout, used by the reference
        self.w_qkv, self.b_qkv_eff = _fold_bn(w_qkv, g_qkv, b_qkv, m_qkv, v_qkv)

        # permute output channels so all-head q, then k, then v are contiguous:
        # new layout = [q_h0..q_h{H-1} | k_h0..k_h{H-1} | v_h0..v_h{H-1}]
        per_head = 2 * key_dim + self.d
        q_idx = [hh * per_head + i for hh in range(num_heads) for i in range(key_dim)]
        k_idx = [hh * per_head + key_dim + i for hh in range(num_heads) for i in range(key_dim)]
        v_idx = [hh * per_head + 2 * key_dim + i for hh in range(num_heads) for i in range(self.d)]
        perm = np.asarray(q_idx + k_idx + v_idx, dtype=np.int32)
        self.w_qkv_packed = jnp.asarray(np.asarray(self.w_qkv)[:, perm])
        self.b_qkv_packed = jnp.asarray(np.asarray(self.b_qkv_eff)[perm])

        # proj LinearNorm params (Linear(dh, dim, bias=False) + BatchNorm1d(dim))
        w_proj = jax.random.normal(ks[5], (dim, self.dh), jnp.float32) * 0.05
        g_proj = jax.random.uniform(ks[6], (dim,), jnp.float32, 0.5, 1.5)
        b_proj = jax.random.normal(ks[7], (dim,), jnp.float32) * 0.1
        m_proj = jax.random.normal(ks[8], (dim,), jnp.float32) * 0.1
        v_proj = jax.random.uniform(ks[9], (dim,), jnp.float32, 0.5, 1.5)
        self.w_proj, self.b_proj_eff = _fold_bn(w_proj, g_proj, b_proj, m_proj, v_proj)

        # attention biases + relative-offset index table (same construction as PyTorch)
        points = list(itertools.product(range(resolution), range(resolution)))
        N = len(points)
        attention_offsets = {}
        idxs = []
        for p1 in points:
            for p2 in points:
                offset = (abs(p1[0] - p2[0]), abs(p1[1] - p2[1]))
                if offset not in attention_offsets:
                    attention_offsets[offset] = len(attention_offsets)
                idxs.append(attention_offsets[offset])
        idxs = np.asarray(idxs, dtype=np.int32).reshape(N, N)
        attention_biases = (
            jax.random.normal(ks[10], (num_heads, len(attention_offsets)), jnp.float32)
            * 0.1
        )
        # precompute bias table (num_heads, N, N) — mirrors get_attention_biases (eval)
        self.ab = jnp.asarray(np.asarray(attention_biases)[:, idxs])
        self.N = N

    def __call__(self, x):
        B, N, C = x.shape
        assert N == self.N and C == self.dim
        return levit_attention_fused(
            x,
            self.w_qkv_packed,
            self.b_qkv_packed,
            self.ab,
            self.w_proj,
            self.b_proj_eff,
            num_heads=self.num_heads,
            key_dim=self.key_dim,
            d=self.d,
            scale=self.scale,
        )

    # pure-JAX reference (uses the ORIGINAL, un-permuted qkv weights so the
    # head-packing permutation is also verified by the allclose check)
    def reference(self, x):
        B, N, C = x.shape
        qkv = x.reshape(B * N, C) @ self.w_qkv + self.b_qkv_eff
        qkv = qkv.reshape(B, N, self.num_heads, -1)
        q = jnp.transpose(qkv[..., : self.key_dim], (0, 2, 1, 3))
        k = jnp.transpose(qkv[..., self.key_dim : 2 * self.key_dim], (0, 2, 1, 3))
        v = jnp.transpose(qkv[..., 2 * self.key_dim :], (0, 2, 1, 3))
        attn = jnp.einsum("bhnd,bhmd->bhnm", q, k) * self.scale + self.ab[None]
        attn = jax.nn.softmax(attn, axis=-1)
        out = jnp.einsum("bhnm,bhmd->bhnd", attn, v)
        out = jnp.transpose(out, (0, 2, 1, 3)).reshape(B * N, self.dh)
        out = out * jnp.clip(out + 3.0, 0.0, 6.0) / 6.0
        out = out @ self.w_proj + self.b_proj_eff
        return out.reshape(B, N, self.dim)


if __name__ == "__main__":
    # small, MXU-friendly shapes consistent with the module
    B = 2
    dim = 32
    key_dim = 8
    num_heads = 2
    attn_ratio = 2
    resolution = 4          # N = 16 tokens
    N = resolution * resolution

    attn = LevitAttention(dim, key_dim, num_heads=num_heads,
                          attn_ratio=attn_ratio, resolution=resolution, seed=0)

    x = jax.random.normal(jax.random.PRNGKey(0), (B, N, dim), jnp.float32)

    y = attn(x)
    y = jax.block_until_ready(y)

    y_ref = attn.reference(x)
    # tolerance covers the approximate (EUP) reciprocal in the softmax normalization
    np.testing.assert_allclose(np.asarray(y), np.asarray(y_ref), rtol=5e-3, atol=5e-3)

    print("KERNEL_OK")
</pallas_src>

<mosaic_0001>
module attributes {stable_mosaic.version = 11 : i64} {
  func.func @_levit_attn_kernel(%arg0: i32, %arg1: memref<1x16x32xf32, #tpu.memory_space<vmem>>, %arg2: memref<32x64xf32, #tpu.memory_space<vmem>>, %arg3: memref<1x64xf32, #tpu.memory_space<vmem>>, %arg4: memref<2x16x16xf32, #tpu.memory_space<vmem>>, %arg5: memref<32x32xf32, #tpu.memory_space<vmem>>, %arg6: memref<1x32xf32, #tpu.memory_space<vmem>>, %arg7: memref<1x16x32xf32, #tpu.memory_space<vmem>>, %arg8: memref<16x32xf32, #tpu.memory_space<vmem>>) attributes {dimension_semantics = [#tpu.dimension_semantics<parallel>], iteration_bounds = array<i64: 2>, scalar_prefetch = 0 : i64, scratch_operands = 1 : i64, tpu.core_type = #tpu.core_type<tc>, window_params = [{transform_indices = @transform_0, window_bounds = array<i64: 1, 16, 32>}, {pipeline_mode = #tpu.pipeline_mode<synchronous>, transform_indices = @transform_1, window_bounds = array<i64: 32, 64>}, {pipeline_mode = #tpu.pipeline_mode<synchronous>, transform_indices = @transform_2, window_bounds = array<i64: 1, 64>}, {pipeline_mode = #tpu.pipeline_mode<synchronous>, transform_indices = @transform_3, window_bounds = array<i64: 2, 16, 16>}, {pipeline_mode = #tpu.pipeline_mode<synchronous>, transform_indices = @transform_4, window_bounds = array<i64: 32, 32>}, {pipeline_mode = #tpu.pipeline_mode<synchronous>, transform_indices = @transform_5, window_bounds = array<i64: 1, 32>}, {transform_indices = @transform_6, window_bounds = array<i64: 1, 16, 32>}]} {
    %c0 = arith.constant 0 : index
    %c0_0 = arith.constant 0 : index
    %c0_1 = arith.constant 0 : index
    %0 = vector.load %arg1[%c0, %c0_0, %c0_1] : memref<1x16x32xf32, #tpu.memory_space<vmem>>, vector<1x16x32xf32>
    %1 = vector.shape_cast %0 : vector<1x16x32xf32> to vector<16x32xf32>
    %c0_2 = arith.constant 0 : index
    %c0_3 = arith.constant 0 : index
    %2 = vector.load %arg2[%c0_2, %c0_3] : memref<32x64xf32, #tpu.memory_space<vmem>>, vector<32x64xf32>
    %cst = arith.constant dense<0.000000e+00> : vector<16x64xf32>
    %3 = tpu.matmul %1, %2, %cst {dimension_numbers = #tpu.dot_dimension_numbers<[1], [0], [0], [1], [0, 0, 1, 1], [], []>} : vector<16x32xf32>, vector<32x64xf32>, vector<16x64xf32> -> vector<16x64xf32>
    %c0_4 = arith.constant 0 : index
    %c0_5 = arith.constant 0 : index
    %4 = vector.load %arg3[%c0_4, %c0_5] : memref<1x64xf32, #tpu.memory_space<vmem>>, vector<1x64xf32>
    %5 = vector.broadcast %4 : vector<1x64xf32> to vector<16x64xf32>
    %6 = arith.addf %3, %5 : vector<16x64xf32>
    %7 = vector.extract_strided_slice %6 {offsets = [0, 0], sizes = [16, 16], strides = [1, 1]} : vector<16x64xf32> to vector<16x16xf32>
    %cst_6 = arith.constant 0.353553385 : f32
    %8 = vector.broadcast %cst_6 : f32 to vector<16x16xf32>
    %9 = arith.mulf %7, %8 : vector<16x16xf32>
    %10 = vector.extract_strided_slice %6 {offsets = [0, 16], sizes = [16, 16], strides = [1, 1]} : vector<16x64xf32> to vector<16x16xf32>
    %11 = vector.extract_strided_slice %6 {offsets = [0, 32], sizes = [16, 32], strides = [1, 1]} : vector<16x64xf32> to vector<16x32xf32>
    %12 = vector.extract_strided_slice %9 {offsets = [0, 0], sizes = [16, 8], strides = [1, 1]} : vector<16x16xf32> to vector<16x8xf32>
    %13 = vector.extract_strided_slice %10 {offsets = [0, 0], sizes = [16, 8], strides = [1, 1]} : vector<16x16xf32> to vector<16x8xf32>
    %14 = vector.extract_strided_slice %11 {offsets = [0, 0], sizes = [16, 16], strides = [1, 1]} : vector<16x32xf32> to vector<16x16xf32>
    %15 = tpu.transpose %13, [1, 0] : vector<16x8xf32> -> vector<8x16xf32>
    %cst_7 = arith.constant dense<0.000000e+00> : vector<16x16xf32>
    %16 = tpu.matmul %12, %15, %cst_7 {dimension_numbers = #tpu.dot_dimension_numbers<[1], [0], [0], [1], [0, 0, 1, 1], [], []>} : vector<16x8xf32>, vector<8x16xf32>, vector<16x16xf32> -> vector<16x16xf32>
    %c0_8 = arith.constant 0 : index
    %c0_9 = arith.constant 0 : index
    %c0_10 = arith.constant 0 : index
    %17 = vector.load %arg4[%c0_8, %c0_9, %c0_10] : memref<2x16x16xf32, #tpu.memory_space<vmem>>, vector<1x16x16xf32>
    %18 = vector.shape_cast %17 : vector<1x16x16xf32> to vector<16x16xf32>
    %19 = arith.addf %16, %18 : vector<16x16xf32>
    %cst_11 = arith.constant dense<0xFF800000> : vector<16xf32>
    %20 = vector.multi_reduction <maximumf>, %19, %cst_11 [1] : vector<16x16xf32> to vector<16xf32>
    %21 = vector.shape_cast %20 : vector<16xf32> to vector<16x1xf32>
    %22 = vector.broadcast %21 : vector<16x1xf32> to vector<16x16xf32>
    %23 = arith.subf %19, %22 : vector<16x16xf32>
    %24 = math.exp %23 : vector<16x16xf32>
    %cst_12 = arith.constant dense<0.000000e+00> : vector<16xf32>
    %25 = vector.multi_reduction <add>, %24, %cst_12 [1] : vector<16x16xf32> to vector<16xf32>
    %26 = vector.shape_cast %25 : vector<16xf32> to vector<16x1xf32>
    %27 = tpu.reciprocal %26 {approx = true} : vector<16x1xf32> -> vector<16x1xf32>
    %28 = vector.broadcast %27 : vector<16x1xf32> to vector<16x16xf32>
    %29 = arith.mulf %24, %28 : vector<16x16xf32>
    %cst_13 = arith.constant dense<0.000000e+00> : vector<16x16xf32>
    %30 = tpu.matmul %29, %14, %cst_13 {dimension_numbers = #tpu.dot_dimension_numbers<[1], [0], [0], [1], [0, 0, 1, 1], [], []>} : vector<16x16xf32>, vector<16x16xf32>, vector<16x16xf32> -> vector<16x16xf32>
    %c0_14 = arith.constant 0 : index
    %c0_15 = arith.constant 0 : index
    %31 = vector.load %arg8[%c0_14, %c0_15] : memref<16x32xf32, #tpu.memory_space<vmem>>, vector<16x16xf32>
    tpu.vector_store %arg8[%c0_14, %c0_15], %30 {strides = array<i32>} : memref<16x32xf32, #tpu.memory_space<vmem>>, vector<16x16xf32>,
    %32 = vector.extract_strided_slice %9 {offsets = [0, 8], sizes = [16, 8], strides = [1, 1]} : vector<16x16xf32> to vector<16x8xf32>
    %33 = vector.extract_strided_slice %10 {offsets = [0, 8], sizes = [16, 8], strides = [1, 1]} : vector<16x16xf32> to vector<16x8xf32>
    %34 = vector.extract_strided_slice %11 {offsets = [0, 16], sizes = [16, 16], strides = [1, 1]} : vector<16x32xf32> to vector<16x16xf32>
    %35 = tpu.transpose %33, [1, 0] : vector<16x8xf32> -> vector<8x16xf32>
    %cst_16 = arith.constant dense<0.000000e+00> : vector<16x16xf32>
    %36 = tpu.matmul %32, %35, %cst_16 {dimension_numbers = #tpu.dot_dimension_numbers<[1], [0], [0], [1], [0, 0, 1, 1], [], []>} : vector<16x8xf32>, vector<8x16xf32>, vector<16x16xf32> -> vector<16x16xf32>
    %c1 = arith.constant 1 : index
    %c0_17 = arith.constant 0 : index
    %c0_18 = arith.constant 0 : index
    %37 = vector.load %arg4[%c1, %c0_17, %c0_18] : memref<2x16x16xf32, #tpu.memory_space<vmem>>, vector<1x16x16xf32>
    %38 = vector.shape_cast %37 : vector<1x16x16xf32> to vector<16x16xf32>
    %39 = arith.addf %36, %38 : vector<16x16xf32>
    %cst_19 = arith.constant dense<0xFF800000> : vector<16xf32>
    %40 = vector.multi_reduction <maximumf>, %39, %cst_19 [1] : vector<16x16xf32> to vector<16xf32>
    %41 = vector.shape_cast %40 : vector<16xf32> to vector<16x1xf32>
    %42 = vector.broadcast %41 : vector<16x1xf32> to vector<16x16xf32>
    %43 = arith.subf %39, %42 : vector<16x16xf32>
    %44 = math.exp %43 : vector<16x16xf32>
    %cst_20 = arith.constant dense<0.000000e+00> : vector<16xf32>
    %45 = vector.multi_reduction <add>, %44, %cst_20 [1] : vector<16x16xf32> to vector<16xf32>
    %46 = vector.shape_cast %45 : vector<16xf32> to vector<16x1xf32>
    %47 = tpu.reciprocal %46 {approx = true} : vector<16x1xf32> -> vector<16x1xf32>
    %48 = vector.broadcast %47 : vector<16x1xf32> to vector<16x16xf32>
    %49 = arith.mulf %44, %48 : vector<16x16xf32>
    %cst_21 = arith.constant dense<0.000000e+00> : vector<16x16xf32>
    %50 = tpu.matmul %49, %34, %cst_21 {dimension_numbers = #tpu.dot_dimension_numbers<[1], [0], [0], [1], [0, 0, 1, 1], [], []>} : vector<16x16xf32>, vector<16x16xf32>, vector<16x16xf32> -> vector<16x16xf32>
    %c0_22 = arith.constant 0 : index
    %c16 = arith.constant 16 : index
    %51 = vector.load %arg8[%c0_22, %c16] : memref<16x32xf32, #tpu.memory_space<vmem>>, vector<16x16xf32>
    tpu.vector_store %arg8[%c0_22, %c16], %50 {strides = array<i32>} : memref<16x32xf32, #tpu.memory_space<vmem>>, vector<16x16xf32>,
    %c0_23 = arith.constant 0 : index
    %c0_24 = arith.constant 0 : index
    %52 = vector.load %arg8[%c0_23, %c0_24] : memref<16x32xf32, #tpu.memory_space<vmem>>, vector<16x32xf32>
    %cst_25 = arith.constant 3.000000e+00 : f32
    %53 = vector.broadcast %cst_25 : f32 to vector<16x32xf32>
    %54 = arith.addf %52, %53 : vector<16x32xf32>
    %cst_26 = arith.constant 0.000000e+00 : f32
    %cst_27 = arith.constant 6.000000e+00 : f32
    %55 = vector.broadcast %cst_26 : f32 to vector<16x32xf32>
    %56 = arith.maximumf %55, %54 : vector<16x32xf32>
    %57 = vector.broadcast %cst_27 : f32 to vector<16x32xf32>
    %58 = arith.minimumf %57, %56 : vector<16x32xf32>
    %cst_28 = arith.constant 0.166666672 : f32
    %59 = vector.broadcast %cst_28 : f32 to vector<16x32xf32>
    %60 = arith.mulf %58, %59 : vector<16x32xf32>
    %61 = arith.mulf %52, %60 : vector<16x32xf32>
    %c0_29 = arith.constant 0 : index
    %c0_30 = arith.constant 0 : index
    %62 = vector.load %arg5[%c0_29, %c0_30] : memref<32x32xf32, #tpu.memory_space<vmem>>, vector<32x32xf32>
    %cst_31 = arith.constant dense<0.000000e+00> : vector<16x32xf32>
    %63 = tpu.matmul %61, %62, %cst_31 {dimension_numbers = #tpu.dot_dimension_numbers<[1], [0], [0], [1], [0, 0, 1, 1], [], []>} : vector<16x32xf32>, vector<32x32xf32>, vector<16x32xf32> -> vector<16x32xf32>
    %c0_32 = arith.constant 0 : index
    %c0_33 = arith.constant 0 : index
    %64 = vector.load %arg6[%c0_32, %c0_33] : memref<1x32xf32, #tpu.memory_space<vmem>>, vector<1x32xf32>
    %65 = vector.broadcast %64 : vector<1x32xf32> to vector<16x32xf32>
    %66 = arith.addf %63, %65 : vector<16x32xf32>
    %c0_34 = arith.constant 0 : index
    %c0_35 = arith.constant 0 : index
    %c0_36 = arith.constant 0 : index
    %67 = vector.load %arg7[%c0_34, %c0_35, %c0_36] : memref<1x16x32xf32, #tpu.memory_space<vmem>>, vector<1x16x32xf32>
    %68 = vector.shape_cast %67 : vector<1x16x32xf32> to vector<16x32xf32>
    %69 = vector.shape_cast %66 : vector<16x32xf32> to vector<1x16x32xf32>
    tpu.vector_store %arg7[%c0_34, %c0_35, %c0_36], %69 {strides = array<i32>} : memref<1x16x32xf32, #tpu.memory_space<vmem>>, vector<1x16x32xf32>,
    return
  }
  func.func @transform_0(%arg0: i32) -> (i32, i32, i32) {
    %c0_i32 = arith.constant 0 : i32
    %c0_i32_0 = arith.constant 0 : i32
    %c0_i32_1 = arith.constant 0 : i32
    return %arg0, %c0_i32, %c0_i32_0 : i32, i32, i32
  }
  func.func @transform_1(%arg0: i32) -> (i32, i32) {
    %c0_i32 = arith.constant 0 : i32
    %c0_i32_0 = arith.constant 0 : i32
    %c0_i32_1 = arith.constant 0 : i32
    return %c0_i32, %c0_i32_0 : i32, i32
  }
  func.func @transform_2(%arg0: i32) -> (i32, i32) {
    %c0_i32 = arith.constant 0 : i32
    %c0_i32_0 = arith.constant 0 : i32
    %c0_i32_1 = arith.constant 0 : i32
    return %c0_i32, %c0_i32_0 : i32, i32
  }
  func.func @transform_3(%arg0: i32) -> (i32, i32, i32) {
    %c0_i32 = arith.constant 0 : i32
    %c0_i32_0 = arith.constant 0 : i32
    %c0_i32_1 = arith.constant 0 : i32
    %c0_i32_2 = arith.constant 0 : i32
    return %c0_i32, %c0_i32_0, %c0_i32_1 : i32, i32, i32
  }
  func.func @transform_4(%arg0: i32) -> (i32, i32) {
    %c0_i32 = arith.constant 0 : i32
    %c0_i32_0 = arith.constant 0 : i32
    %c0_i32_1 = arith.constant 0 : i32
    return %c0_i32, %c0_i32_0 : i32, i32
  }
  func.func @transform_5(%arg0: i32) -> (i32, i32) {
    %c0_i32 = arith.constant 0 : i32
    %c0_i32_0 = arith.constant 0 : i32
    %c0_i32_1 = arith.constant 0 : i32
    return %c0_i32, %c0_i32_0 : i32, i32
  }
  func.func @transform_6(%arg0: i32) -> (i32, i32, i32) {
    %c0_i32 = arith.constant 0 : i32
    %c0_i32_0 = arith.constant 0 : i32
    %c0_i32_1 = arith.constant 0 : i32
    return %arg0, %c0_i32, %c0_i32_0 : i32, i32, i32
  }
}

</mosaic_0001>

<bundles_post_ra>
// kernel: tpu_custom_call.1
= control target key start
LH: loop header
LB: loop body
LE: loop exit
PB: predicated region body
PF: predicated region fallthrough
CT: control target
= control target key end

     0   :  { %11 = vsyncpa [#allocation4], 0  ;;  %s1895_s0 = inlined_call_operand.hbm [shape: f32[2,16,32], index: 0, kind: input, shape index: {}]   ;;  %s1896_s1 = inlined_call_operand.hbm [shape: f32[32,64], index: 1, kind: input, shape index: {}]   ;;  %s1897_s2 = inlined_call_operand.vmem [shape: f32[1,64], index: 2, kind: input, shape index: {}]   ;;  %s1898_s3 = inlined_call_operand.hbm [shape: f32[2,16,16], index: 3, kind: input, shape index: {}]   ;;  %s1899_s4 = inlined_call_operand.hbm [shape: f32[32,32], index: 4, kind: input, shape index: {}]   ;;  %s1900_s5 = inlined_call_operand.vmem [shape: f32[1,32], index: 5, kind: input, shape index: {}]   ;;  %s1901_s6 = inlined_call_operand.hbm [shape: f32[2,16,32], index: 6, kind: output, shape index: {}]  }
   0x1   :  { %13 = vsyncpa [#allocation4 + $0x1], 0 }
   0x2   :  { %14 = vsyncpa [#allocation7], 0 }
   0x3   :  { %15 = vsyncpa [#allocation10], 0 }
   0x4   :  { %16 = vsyncpa [#allocation5], 0 }
   0x5   :  { %18 = vsyncpa [#allocation5 + $0x1], 0  ;;  %s1570_s21 = smov 0   ;;  %s1572_s22 = smov 0  }
   0x6   :  { %s1574_s23 = smov 0   ;;  %s1576_s24 = smov 0  }
   0x7 LB: > { %s1591_s25 = sadd.s32 4294967295, %s1518_s24   ;;  %s1053_s26 = sadd.s32 4294967294, %s1518_s24   ;;  %s1518_s24 = sphi %s1576_s24, %s1926_s24   ;;  %s1514_s23 = sphi %s1574_s23, %s1925_s23   ;;  %s1510_s22 = sphi %s1572_s22, %s1924_s22   ;;  %s1506_s21 = sphi %s1570_s21, %s1923_s21  }
   0x8   : > { %p44_p0 = scmp.ne.s32.totalorder %s1510_s22, %s1506_s21  ;;  %p1902_p1 = scmp.eq.s32.totalorder %s1591_s25, 0 }
   0x9   : > { %p179_p3 = scmp.eq.s32.totalorder %s1053_s26, 1  ;;  %p1054_p5 = scmp.ge.s32.totalorder %s1518_s24, 1 }
   0xa   : > { %p1600_p4 = por %p1902_p1, %p44_p0  ;;  %p186_p7 = scmp.lt.s32.totalorder %s1518_s24, 3 }
   0xb   : > { %p1605_p6 = por %p179_p3, %p44_p0  ;;  %s1520_s30 = smov [#allocation6]  }
   0xc   : > { %s1905_s27 = scalar_select %p1600_p4, 1, 0 }
   0xd   : > { %s1906_s28 = scalar_select %p1605_p6, 1, 0 }
   0xe   : > { %p1610_p8 = pnand %p1054_p5, %p186_p7  ;;  %s198_s7 = sshll.u32 %s1520_s30, 4  ;;  %s1614_s7 = int_to_ptr.vmem [resolvable:$true] %s198_s7 }
   0xf   : > { %s1521_s9 = smov [#allocation8]   ;;  %s1522_s11 = smov [#allocation9]  }
  0x10   : > { %s1907_s29 = scalar_select %p1610_p8, 1, 0 }
  0x11   : > { %p1223_p9 = pneg %p1610_p8  ;;  %s214_s10 = sshll.u32 %s1521_s9, 4  ;;  %s1625_s10 = int_to_ptr.vmem [resolvable:$true] %s214_s10 }
  0x12   : > { %s1627_s12 = sshll.u32 %s1522_s11, 4  ;;  %s1330_s15 = scalar_lea.hbm %s1896_s1, 512  ;;  %s228_s12 = int_to_ptr.vmem [resolvable:$true] %s1627_s12 }
  0x13   : > { %p1621_p11 = pnand %p1223_p9, %p1902_p1  ;;  %p1331_p12 = scmp.ne.s32.totalorder %s1896_s1, %s1330_s15 }
  0x14   : > { %p1337_p5 = scmp.lt.u32.totalorder %s1330_s15, %s1896_s1 }
  0x15   : > { %p1637_p13 = pneg %p1621_p11 }
  0x17   : > { %p1333_p0 = pnand %p1637_p13, %p1331_p12 }
  0x19   : > { %p1334_p3 = pneg %p1333_p0 }
  0x1b   : > { %p1339_p7 = pnand %p1337_p5, %p1334_p3 }
  0x1d   : > { %1342 = shalt.err (!%p1339_p7)
}
  0x1e   : > { %s1343_s26 = scalar_lea.vmem %s1614_s7, 512  ;;  %p1351_p2 = scmp.lt.s32.totalorder %s1614_s7, %s1614_s7 }
  0x1f   : > { %p1344_p9 = scmp.ne.s32.totalorder %s1614_s7, %s1343_s26  ;;  %p1352_p6 = scmp.lt.s32.totalorder %s1343_s26, %s1343_s26 }
  0x21   : > { %p1346_p10 = pnand %p1344_p9, %p1637_p13  ;;  %p1353_p12 = por %p1352_p6, %p1351_p2 }
  0x23   : > { %p1347_p1 = pneg %p1346_p10 }
  0x25   : > { %p1354_p0 = pnand %p1353_p12, %p1347_p1 }
  0x27   : > { %1357 = shalt.err (!%p1354_p0)
}
  0x28   : > { %s1523_s30 = smov 128   ;;  %s1524_s9 = smov 8  }
  0x29   : > { %1226 = dma.hbm_to_vmem [thread:$0]  (!%p1621_p11), %s1896_s1, 512, %s1614_s7, [#allocation7], %s1523_s30, %s1523_s30, %s1524_s9  }
  0x2a   : > { %s1358_s16 = scalar_lea.hbm %s1898_s3, 512 }
  0x2b   : > { %p1359_p1 = scmp.ne.s32.totalorder %s1898_s3, %s1358_s16  ;;  %p1365_p10 = scmp.lt.u32.totalorder %s1358_s16, %s1898_s3 }
  0x2d   : > { %p1361_p2 = pnand %p1359_p1, %p1637_p13 }
  0x2f   : > { %p1362_p6 = pneg %p1361_p2 }
  0x31   : > { %p1367_p3 = pnand %p1365_p10, %p1362_p6 }
  0x33   : > { %1370 = shalt.err (!%p1367_p3)
}
  0x34   : > { %s1371_s7 = scalar_lea.vmem %s1625_s10, 512  ;;  %p1379_p12 = scmp.lt.s32.totalorder %s1625_s10, %s1625_s10 }
  0x35   : > { %p1372_p5 = scmp.ne.s32.totalorder %s1625_s10, %s1371_s7  ;;  %p1380_p0 = scmp.lt.s32.totalorder %s1371_s7, %s1371_s7 }
  0x37   : > { %p1374_p7 = pnand %p1372_p5, %p1637_p13  ;;  %p1381_p1 = por %p1380_p0, %p1379_p12 }
  0x39   : > { %p1375_p9 = pneg %p1374_p7 }
  0x3b   : > { %p1382_p2 = pnand %p1381_p1, %p1375_p9 }
  0x3d   : > { %1385 = shalt.err (!%p1382_p2)
}
  0x3e   : > { %1229 = dma.hbm_to_vmem [thread:$0]  (!%p1621_p11), %s1898_s3, 512, %s1625_s10, [#allocation7], %s1523_s30, %s1523_s30, %s1524_s9  }
  0x3f   : > { %s1386_s16 = scalar_lea.hbm %s1899_s4, 512 }
  0x40   : > { %p1387_p6 = scmp.ne.s32.totalorder %s1899_s4, %s1386_s16  ;;  %p1393_p5 = scmp.lt.u32.totalorder %s1386_s16, %s1899_s4 }
  0x42   : > { %p1389_p10 = pnand %p1387_p6, %p1637_p13 }
  0x44   : > { %p1390_p3 = pneg %p1389_p10 }
  0x46   : > { %p1395_p7 = pnand %p1393_p5, %p1390_p3 }
  0x48   : > { %1398 = shalt.err (!%p1395_p7)
}
  0x49   : > { %s1399_s7 = scalar_lea.vmem %s228_s12, 512  ;;  %p1407_p1 = scmp.lt.s32.totalorder %s228_s12, %s228_s12 }
  0x4a   : > { %p1400_p9 = scmp.ne.s32.totalorder %s228_s12, %s1399_s7  ;;  %p1408_p2 = scmp.lt.s32.totalorder %s1399_s7, %s1399_s7 }
  0x4c   : > { %p1402_p12 = pnand %p1400_p9, %p1637_p13  ;;  %p1409_p4 = por %p1408_p2, %p1407_p1 }
  0x4e   : > { %p1403_p0 = pneg %p1402_p12 }
  0x50   : > { %p1410_p8 = pnand %p1409_p4, %p1403_p0 }
  0x52   : > { %1413 = shalt.err (!%p1410_p8)
}
  0x53   : > { %1232 = dma.hbm_to_vmem [thread:$0]  (!%p1621_p11), %s1899_s4, 512, %s228_s12, [#allocation10], %s1523_s30, %s1523_s30, %s1524_s9  }
  0x54   : > { %s1710_s18 = sadd.s32 1, %s1518_s24   ;;  %s31_s13 = sadd.s32 1, %s1514_s23 }
  0x55   : > { %s28_s8 = ssub.s32 %s1518_s24, %s1710_s18  ;;  %p38_p8 = scmp.ne.s32.totalorder %s1514_s23, %s1510_s22 }
  0x56   : > { %p29_p4 = scmp.eq.s32.totalorder %s28_s8, 0  ;;  %p39_p13 = scmp.eq.s32.totalorder %s1518_s24, 0 }
  0x57   : > { %p1244_p6 = scmp.lt.s32.totalorder %s1518_s24, 2  ;;  %p1910_p3 = scmp.eq.s32.totalorder %s1591_s25, 1 }
  0x58   : > { %s1720_s14 = scalar_select %p29_p4, %s1514_s23, %s31_s13  }
  0x59   : > { %p40_p10 = por %p39_p13, %p38_p8  ;;  %p1724_p5 = por %p1910_p3, %p38_p8 }
  0x5a   : > { %s244_s16 = sand.u32 1, %s1514_s23   ;;  %s1091_s17 = sshll.u32 %s1518_s24, 8 }
  0x5b   : > { %s1059_s12 = sshll.u32 %s244_s16, 4  ;;  %s1733_s26 = scalar_lea.hbm %s1895_s0, %s1091_s17 }
  0x5c   : > { %s248_s7 = scalar_lea.vmem [#allocation3], %s1059_s12  ;;  %p1735_p11 = pnand %p1244_p6, %p40_p10 }
  0x5d   : > { %s255_s10 = sshll.u32 %s248_s7, 4  ;;  %s1741_s8 = scalar_lea.sflag [#allocation4], %s244_s16  ;;  %s1739_s10 = int_to_ptr.vmem [resolvable:$true] %s255_s10 }
  0x5e   : > { %s1414_s13 = scalar_lea.hbm %s1733_s26, 256  ;;  %p1416_p9 = pneg %p1735_p11 }
  0x5f   : > { %p1415_p7 = scmp.ne.s32.totalorder %s1733_s26, %s1414_s13  ;;  %s1419_s19 = scalar_lea.hbm %s1895_s0, 512 }
  0x60   : > { %p1420_p1 = scmp.lt.u32.totalorder %s1733_s26, %s1895_s0  ;;  %p1421_p2 = scmp.lt.u32.totalorder %s1419_s19, %s1414_s13 }
  0x61   : > { %p1417_p12 = pnand %p1416_p9, %p1415_p7  ;;  %p1423_p8 = scmp.lt.u32.totalorder %s1414_s13, %s1733_s26 }
  0x62   : > { %p1422_p4 = por %p1421_p2, %p1420_p1 }
  0x63   : > { %p1418_p0 = pneg %p1417_p12 }
  0x64   : > { %p1424_p13 = por %p1423_p8, %p1422_p4 }
  0x66   : > { %p1425_p6 = pnand %p1424_p13, %p1418_p0 }
  0x68   : > { %1428 = shalt.err (!%p1425_p6)
}
  0x69   : > { %s1429_s16 = scalar_lea.vmem %s1739_s10, 256  ;;  %s1525_s17 = smov [#allocation3]  }
  0x6a   : > { %p1430_p10 = scmp.ne.s32.totalorder %s1739_s10, %s1429_s16  ;;  %s1434_s12 = sshll.u32 %s1525_s17, 4  ;;  %s1435_s12 = int_to_ptr.vmem [resolvable:$false] %s1434_s12 }
  0x6b   : > { %s1436_s20 = scalar_lea.vmem %s1435_s12, 512  ;;  %p1437_p12 = scmp.lt.s32.totalorder %s1739_s10, %s1435_s12 }
  0x6c   : > { %p1432_p3 = pnand %p1430_p10, %p1416_p9  ;;  %p1438_p1 = scmp.lt.s32.totalorder %s1436_s20, %s1429_s16 }
  0x6e   : > { %p1433_p7 = pneg %p1432_p3  ;;  %p1439_p2 = por %p1438_p1, %p1437_p12 }
  0x70   : > { %p1440_p4 = pnand %p1439_p2, %p1433_p7 }
  0x72   : > { %1443 = shalt.err (!%p1440_p4)
}
  0x73   : > { %1236 = dma.hbm_to_vmem [thread:$0]  (!%p1735_p11), %s1733_s26, 256, %s1739_s10, %s1741_s8, %s1523_s30, %s1523_s30, %s1524_s9  }
  0x74   : > { %p1913_p9 = scmp.ne.s32.totalorder %s1907_s29, 0 }
  0x75   : > { %s1775_s13 = sand.u32 (!%p1913_p9), 1, %s1510_s22   ;;  %p1914_p0 = scmp.ne.s32.totalorder (!%p1913_p9), %s1905_s27, 0 }
  0x76   : > { %267 = sbr.rel (%p1913_p9) target bundleno = 2139 (0x85b), region = 44  ;;  %s1063_s19 = sshll.u32 (!%p1913_p9), %s1775_s13, 4 }
  0x77   : > { %s270_s7 = scalar_lea.sflag (!%p1913_p9), [#allocation4], %s1775_s13  ;;  %s273_s11 = scalar_lea.vmem (!%p1913_p9), [#allocation3], %s1063_s19 }
  0x7d   : > { %1489 = dma.done.wait (%p1914_p0), %s270_s7, 256  }
  0x7e   : > { %1491 = vsyncadd (%p1914_p0), %s270_s7, 4294967040  ;;  %p1915_p11 = scmp.eq.s32.totalorder %s1591_s25, 0 }
  0x80   : > { %1493 = dma.done.wait (%p1915_p11), [#allocation7], 1024   ;;  %p1916_p8 = pmov %p1915_p11 }
  0x82   : > { %1495 = vsyncadd (%p1916_p8), [#allocation7], 4294966272  ;;  %p1917_p13 = pmov %p1916_p8 }
  0x83   : > { %p1918_p6 = pmov %p1916_p8 }
  0x84   : > { %1497 = dma.done.wait (%p1917_p13), [#allocation10], 512  }
  0x85   : > { %1499 = vsyncadd (%p1918_p6), [#allocation10], 4294966784  ;;  %vm327_vm0 = vcmask 261120   ;;  %v316_v0 = vld [vmem:[#allocation6] sm:$0xff]  ;;  %v317_v1 = vld [vmem:[#allocation6 + $0x8] sm:$0xff]  ;;  %vm419_vm1 = vcmask 64512  }
  0x86   : > { %v318_v2 = vld [vmem:[#allocation6 + $0x10] sm:$0xff]  ;;  %v1171_v3 = vpack.c.bf16 %v317_v1, %v316_v0  ;;  %v319_v4 = vld [vmem:[#allocation6 + $0x18] sm:$0xff]  ;;  %s1526_s30 = smov 112   ;;  %vm1804_vm2 = vmpackc.low %vm419_vm1, %vm419_vm1  ;;  %vm505_vm3 = vcmask 130048   ;;  %s1527_s9 = smov 96   ;;  %vm828_vm4 = vcmask 261248  }
  0x87   : > { %v314_v5 = vld [vmem:[%s273_s11] sm:$0xff]  ;;  %v1175_v6 = vpack.c.bf16 %v319_v4, %v318_v2  ;;  %v315_v7 = vld [vmem:[%s273_s11 + $0x8] sm:$0xff]  ;;  %s1528_s26 = smov 104   ;;  %s1529_s10 = smov 120  }
  0x88   : > { %1129 = vmatprep.mubr.msk.f32.mxu0 %vm327_vm0, %v314_v5  ;;  %1172 = vmatprep.subr.bf16.mxu0 %v1171_v3  ;;  %v1068_v8 = vld [vmem:[%s1897_s2] ss:$0 sm:$0xff]  ;;  %v412_v21 = vld [vmem:[#allocation8 + $0x8] sm:$0xff]  ;;  %v411_v22 = vld [vmem:[#allocation8] sm:$0xff]  ;;  %s1530_s8 = smov 80   ;;  %s1531_s16 = smov 16  }
  0x89   : > { %1174 = vmatpush3.bf16.msra.mxu0 %v1171_v3  ;;  %v619_v57 = vld [vmem:[#allocation8 + $0x18] sm:$0xff]  ;;  %v618_v58 = vld [vmem:[#allocation8 + $0x10] sm:$0xff]  ;;  %s313_s17 = scalar_lea.vmem [#allocation11], %s1063_s19  ;;  %s1092_s11 = sshll.u32 %s1591_s25, 8 }
  0x8a   : > { %1176 = vmatprep.subr.bf16.mxu0 %v1175_v6  ;;  %s951_s12 = sshll.u32 %s313_s17, 4  ;;  %s938_s19 = scalar_lea.sflag [#allocation5], %s1775_s13  ;;  %s1844_s12 = int_to_ptr.vmem [resolvable:$true] %s951_s12 }
  0x8b   : > { %s1444_s25 = scalar_lea.vmem %s1844_s12, 256 }
  0x8c   : > { %p1445_p10 = scmp.ne.s32.totalorder %s1844_s12, %s1444_s25 }
  0x8d   : > { %1178 = vmatpush3.bf16.msra.mxu0 %v1175_v6 }
  0x8e   : > { %p1446_p3 = pnand %p1445_p10, %p1724_p5 }
  0x90   : > { %1130 = vmatmul.mubr.msk.f32.vlgmr.msra.gmra.mrb[0].mxu0 %vm327_vm0, %v315_v7  ;;  %p1447_p7 = pneg %p1446_p3 }
 0x163   : > { %v1131_v9 = vpop.f32.mrb[0].mxu0 }
 0x164   : > { %v406_v10 = vadd.f32 %v1131_v9, %v1068_v8  ;;  %v400_v11 = vpop.f32.mrb[1].mxu0 }
 0x165   : > { %v401_v12 = vadd.f32 %v1068_v8, %v400_v11 }
 0x166   : > { %v410_v20 = vmul.f32 0.35355338, %v406_v10 }
 0x167   : > { %v1798_v13 = vpack.i.bf16 %v406_v10, %v401_v12  ;;  %v409_v14 = vmul.f32 0.35355338, %v401_v12 }
 0x169   : > { %1295 = vrot.lane.b32.xlu0 %v1798_v13, %s1526_s30  ;;  %1136 = vmatprep.mubr.msk.f32.mxu1 %vm419_vm1, %v409_v14  ;;  %s1849_s30 = scalar_lea.hbm %s1901_s6, %s1092_s11 }
 0x1db   : > { %v1296_v15 = vpop.permute.xlu0 %1295 }
 0x1dc   : > { %v1298_v16 = vunpack.i.h.bf16 %v1296_v15  ;;  %v1297_v17 = vunpack.i.l.bf16 %v1296_v15 }
 0x1de   : > { %v1179_v19 = vpack.c.bf16 %v1298_v16, %v1297_v17 }
 0x1e0   : > { %1181 = vmatprep.subr.msk.bf16.mxu1 %vm1804_vm2, %v1179_v19 }
 0x1e1   : > { %1184 = vmatpush3.bf16.xpose.msk.msra.mxu1 %vm1804_vm2, %v1179_v19 }
 0x1e8   : > { %1137 = vmatmul.mubr.msk.f32.vlgmr.msra.gmra.mrb[0].mxu1 %vm419_vm1, %v410_v20 }
 0x2bb   : > { %v1138_v23 = vpop.f32.mrb[0].mxu1 }
 0x2bc   : > { %v502_v24 = vadd.f32 %v1138_v23, %v412_v21  ;;  %v496_v25 = vpop.f32.mrb[1].mxu1  ;;  %v845_v23 = vld [vmem:[#allocation9 + $0x10] sm:$0xff] }
 0x2bd   : > { %v497_v26 = vadd.f32 %v496_v25, %v411_v22  ;;  %v843_v22 = vld [vmem:[#allocation9] sm:$0xff]  ;;  %v846_v25 = vld [vmem:[#allocation9 + $0x18] sm:$0xff] }
 0x2be   : > { %v509_v27 = vsel %vm505_vm3, %v502_v24, -inf }
 0x2bf   : > { %510 = vmax.xlane.f32.xlu1 %v509_v27  ;;  %v506_v28 = vsel %vm505_vm3, %v497_v26, -inf }
 0x2c0   : > { %507 = vmax.xlane.f32.xlu0 %v506_v28 }
 0x2d0   : > { %1300 = vrot.lane.b32.xlu1 %v1798_v13, %s1527_s9  ;;  %s1532_s9 = smov [#allocation11]  }
 0x2d4   : > { %1305 = vrot.lane.b32.xlu1 %v1798_v13, %s1528_s26  ;;  %s1448_s26 = sshll.u32 %s1532_s9, 4  ;;  %s1449_s26 = int_to_ptr.vmem [resolvable:$false] %s1448_s26 }
 0x2d5   : > { %p1451_p12 = scmp.lt.s32.totalorder %s1844_s12, %s1449_s26 }
 0x2d6   : > { %622 = vrot.lane.b32.xlu0 %v410_v20, %s1529_s10 }
 0x34c   : > { %v511_v29 = vpop.xlane.xlu1 %510 }
 0x34d   : > { %v513_v30 = vsub.f32 %v502_v24, %v511_v29  ;;  %v508_v31 = vpop.xlane.xlu0 %507 }
 0x34e   : > { %v512_v32 = vsub.f32 %v497_v26, %v508_v31  ;;  %v1203_v26 = vpack.c.bf16 %v846_v25, %v845_v23 }
 0x34f   : > { %v516_v33 = vmul.f32 1.442695, %v513_v30 }
 0x350   : > { %v514_v34 = vmul.f32 1.442695, %v512_v32  ;;  %v1301_v35 = vpop.permute.xlu1 %1300 }
 0x351   : > { %1314 = vpow2.f32 %v516_v33  ;;  %v1303_v36 = vunpack.i.h.bf16 %v1301_v35  ;;  %v1302_v37 = vunpack.i.l.bf16 %v1301_v35  ;;  %v623_v54 = vpop.permute.xlu0 %622 }
 0x352   : > { %1316 = vpow2.f32 %v514_v34 }
 0x353   : > { %v1185_v38 = vpack.c.bf16 %v1303_v36, %v1302_v37 }
 0x354   : > { %v1306_v39 = vpop.permute.xlu1 %1305 }
 0x355   : > { %v1308_v40 = vunpack.i.h.bf16 %v1306_v39  ;;  %v1307_v41 = vunpack.i.l.bf16 %v1306_v39  ;;  %1186 = vmatprep.subr.bf16.mxu1 %v1185_v38 }
 0x356   : > { %1188 = vmatpush3.bf16.msra.mxu1 %v1185_v38 }
 0x357   : > { %v1189_v42 = vpack.c.bf16 %v1308_v40, %v1307_v41 }
 0x359   : > { %1191 = vmatprep.subr.msk.bf16.mxu1 %vm1804_vm2, %v1189_v42 }
 0x35b   : > { %v1315_v43 = vpop.eup %1314 }
 0x35c   : > { %v521_v44 = vsel %vm505_vm3, %v1315_v43, 0.0  ;;  %v1317_v45 = vpop.eup %1316 }
 0x35d   : > { %522 = vadd.xlane.f32.xlu1 %v521_v44  ;;  %v518_v46 = vsel %vm505_vm3, %v1317_v45, 0.0 }
 0x361   : > { %519 = vadd.xlane.f32.xlu1 %v518_v46 }
 0x372   : > { %620 = vrot.lane.b32.xlu1 %v409_v14, %s1529_s10  ;;  %s1450_s10 = scalar_lea.vmem %s1449_s26, 512 }
 0x373   : > { %p1452_p1 = scmp.lt.s32.totalorder %s1450_s10, %s1444_s25 }
 0x375   : > { %p1453_p2 = por %p1452_p1, %p1451_p12 }
 0x377   : > { %p1454_p4 = pnand %p1453_p2, %p1447_p7 }
 0x3ea   : > { %v523_v47 = vpop.xlane.xlu1 %522 }
 0x3eb   : > { %1318 = vrcp.f32 %v523_v47 }
 0x3ee   : > { %v520_v48 = vpop.xlane.xlu1 %519 }
 0x3ef   : > { %1320 = vrcp.f32 %v520_v48 }
 0x3f2   : > { %v621_v53 = vpop.permute.xlu1 %620 }
 0x3f5   : > { %v1319_v49 = vpop.eup %1318 }
 0x3f6   : > { %v527_v52 = vmul.f32 %v1319_v49, %v1315_v43  ;;  %v1083_v43 = vld [vmem:[%s1900_s5] ss:$0 sm:$0xff] }
 0x3f9   : > { %v1321_v50 = vpop.eup %1320 }
 0x3fa   : > { %v526_v51 = vmul.f32 %v1321_v50, %v1317_v45 }
 0x3fc   : > { %1143 = vmatprep.mubr.msk.f32.mxu1 %vm505_vm3, %v526_v51 }
 0x3fd   : > { %1144 = vmatmul.mubr.msk.f32.vlgmr.msra.gmra.mrb[2].mxu1 %vm505_vm3, %v527_v52 }
 0x3fe   : > { %1194 = vmatpush3.bf16.xpose.msk.msra.mxu1 %vm1804_vm2, %v1189_v42  ;;  %1150 = vmatprep.mubr.msk.f32.mxu1 %vm419_vm1, %v621_v53 }
 0x405   : > { %1151 = vmatmul.mubr.msk.f32.vlgmr.msra.gmra.mrb[4].mxu1 %vm419_vm1, %v623_v54 }
 0x4d0   : > { %v1145_v55 = vpop.f32.mrb[2].mxu1 }
 0x4d1   : > { %616 = vst.msk [vmem:[#allocation2 + $0x8] sm:$0xff] %vm505_vm3, %v1145_v55  ;;  %v606_v56 = vpop.f32.mrb[3].mxu1 }
 0x4d2   : > { %615 = vst.msk [vmem:[#allocation2] sm:$0xff] %vm505_vm3, %v606_v56 }
 0x4d8   : > { %v1152_v59 = vpop.f32.mrb[4].mxu1 }
 0x4d9   : > { %v708_v60 = vadd.f32 %v1152_v59, %v619_v57  ;;  %v702_v61 = vpop.f32.mrb[5].mxu1 }
 0x4da   : > { %v703_v62 = vadd.f32 %v702_v61, %v618_v58 }
 0x4db   : > { %v714_v63 = vsel %vm505_vm3, %v708_v60, -inf }
 0x4dc   : > { %715 = vmax.xlane.f32.xlu0 %v714_v63  ;;  %v711_v0 = vsel %vm505_vm3, %v703_v62, -inf }
 0x4dd   : > { %712 = vmax.xlane.f32.xlu1 %v711_v0 }
 0x569   : > { %v716_v1 = vpop.xlane.xlu0 %715 }
 0x56a   : > { %v718_v2 = vsub.f32 %v708_v60, %v716_v1  ;;  %v713_v3 = vpop.xlane.xlu1 %712 }
 0x56b   : > { %v717_v4 = vsub.f32 %v703_v62, %v713_v3 }
 0x56c   : > { %v721_v5 = vmul.f32 1.442695, %v718_v2 }
 0x56d   : > { %v719_v6 = vmul.f32 1.442695, %v717_v4 }
 0x56e   : > { %1322 = vpow2.f32 %v721_v5 }
 0x56f   : > { %1324 = vpow2.f32 %v719_v6 }
 0x578   : > { %v1323_v7 = vpop.eup %1322 }
 0x579   : > { %v726_v8 = vsel %vm505_vm3, %v1323_v7, 0.0  ;;  %v1325_v9 = vpop.eup %1324 }
 0x57a   : > { %727 = vadd.xlane.f32.xlu1 %v726_v8  ;;  %v723_v10 = vsel %vm505_vm3, %v1325_v9, 0.0 }
 0x57e   : > { %724 = vadd.xlane.f32.xlu1 %v723_v10 }
 0x58f   : > { %1310 = vrot.lane.b32.xlu1 %v1798_v13, %s1530_s8  ;;  %v844_v13 = vld [vmem:[#allocation9 + $0x8] sm:$0xff] }
 0x590   : > { %v1199_v24 = vpack.c.bf16 %v844_v13, %v843_v22 }
 0x607   : > { %v728_v11 = vpop.xlane.xlu1 %727 }
 0x608   : > { %1326 = vrcp.f32 %v728_v11 }
 0x60b   : > { %v725_v12 = vpop.xlane.xlu1 %724 }
 0x60c   : > { %1328 = vrcp.f32 %v725_v12 }
 0x60f   : > { %v1311_v14 = vpop.permute.xlu1 %1310 }
 0x610   : > { %v1313_v15 = vunpack.i.h.bf16 %v1311_v14  ;;  %v1312_v16 = vunpack.i.l.bf16 %v1311_v14 }
 0x612   : > { %v1195_v17 = vpack.c.bf16 %v1313_v15, %v1312_v16  ;;  %v1327_v18 = vpop.eup %1326 }
 0x613   : > { %v732_v21 = vmul.f32 %v1327_v18, %v1323_v7 }
 0x614   : > { %1196 = vmatprep.subr.bf16.mxu0 %v1195_v17 }
 0x615   : > { %1198 = vmatpush3.bf16.msra.mxu0 %v1195_v17 }
 0x616   : > { %v1329_v19 = vpop.eup %1328  ;;  %1200 = vmatprep.subr.bf16.mxu0 %v1199_v24 }
 0x617   : > { %v731_v20 = vmul.f32 %v1329_v19, %v1325_v9 }
 0x619   : > { %1157 = vmatprep.mubr.msk.f32.mxu0 %vm505_vm3, %v731_v20 }
 0x61a   : > { %1158 = vmatmul.mubr.msk.f32.vlgmr.msra.gmra.mrb[2].mxu0 %vm505_vm3, %v732_v21 }
 0x61b   : > { %1202 = vmatpush3.bf16.msra.mxu0 %v1199_v24 }
 0x61c   : > { %1204 = vmatprep.subr.bf16.mxu0 %v1203_v26 }
 0x61f   : > { %1206 = vmatpush3.bf16.msra.mxu0 %v1203_v26 }
 0x6ed   : > { %v1159_v27 = vpop.f32.mrb[2].mxu0 }
 0x6ee   : > { %824 = vrot.lane.b32.xlu1 %v1159_v27, %s1531_s16  ;;  %v811_v28 = vpop.f32.mrb[3].mxu0 }
 0x6ef   : > { %822 = vrot.lane.b32.xlu0 %v811_v28, %s1531_s16 }
 0x760   : > { %v825_v29 = vpop.permute.xlu1 %824 }
 0x761   : > { %830 = vst.msk [vmem:[#allocation2 + $0x8] sm:$0xff] %vm828_vm4, %v825_v29  ;;  %v823_v30 = vpop.permute.xlu0 %822 }
 0x762   : > { %829 = vst.msk [vmem:[#allocation2] sm:$0xff] %vm828_vm4, %v823_v30 }
 0x768   : > { %v832_v31 = vld [vmem:[#allocation2 + $0x8] sm:$0xff] }
 0x769   : > { %v831_v32 = vld [vmem:[#allocation2] sm:$0xff]  ;;  %v834_v33 = vadd.f32 3.0, %v832_v31 }
 0x76a   : > { %v833_v34 = vadd.f32 3.0, %v831_v32 }
 0x76b   : > { %v836_v35 = vmax.f32 %v834_v33, 0.0 }
 0x76c   : > { %v835_v36 = vmax.f32 %v833_v34, 0.0 }
 0x76d   : > { %v838_v37 = vmin.f32 %v836_v35, 6.0 }
 0x76e   : > { %v837_v38 = vmin.f32 %v835_v36, 6.0 }
 0x76f   : > { %v840_v39 = vmul.f32 0.16666667, %v838_v37 }
 0x770   : > { %v839_v40 = vmul.f32 0.16666667, %v837_v38 }
 0x771   : > { %v842_v42 = vmul.f32 %v840_v39, %v832_v31 }
 0x772   : > { %v841_v41 = vmul.f32 %v839_v40, %v831_v32 }
 0x774   : > { %1168 = vmatprep.mubr.msk.f32.mxu0 %vm327_vm0, %v841_v41 }
 0x775   : > { %1169 = vmatmul.mubr.msk.f32.vlgmr.msra.gmra.mrb[4].mxu0 %vm327_vm0, %v842_v42 }
 0x848   : > { %v1170_v44 = vpop.f32.mrb[4].mxu0 }
 0x849   : > { %v932_v45 = vadd.f32 %v1170_v44, %v1083_v43  ;;  %v926_v46 = vpop.f32.mrb[5].mxu0 }
 0x84a   : > { %v927_v47 = vadd.f32 %v1083_v43, %v926_v46 }
 0x84b   : > { %936 = vst.msk [vmem:[%s313_s17 + $0x8] sm:$0xff] %vm327_vm0, %v932_v45 }
 0x84c   : > { %935 = vst.msk [vmem:[%s313_s17] sm:$0xff] %vm327_vm0, %v927_v47 }
 0x84d   : > { %1457 = shalt.err (!%p1454_p4)
}
 0x84e   : > { %s1458_s8 = scalar_lea.hbm %s1849_s30, 256  ;;  %s1462_s20 = scalar_lea.hbm %s1901_s6, 512 }
 0x84f   : > { %p1459_p9 = scmp.ne.s32.totalorder %s1849_s30, %s1458_s8  ;;  %p1463_p8 = scmp.lt.u32.totalorder %s1849_s30, %s1901_s6 }
 0x850   : > { %p1464_p13 = scmp.lt.u32.totalorder %s1462_s20, %s1458_s8  ;;  %p1466_p10 = scmp.lt.u32.totalorder %s1458_s8, %s1849_s30 }
 0x851   : > { %p1460_p0 = pnand %p1459_p9, %p1724_p5 }
 0x852   : > { %p1465_p6 = por %p1464_p13, %p1463_p8 }
 0x853   : > { %p1461_p11 = pneg %p1460_p0 }
 0x854   : > { %p1467_p3 = por %p1466_p10, %p1465_p6 }
 0x856   : > { %p1468_p7 = pnand %p1467_p3, %p1461_p11 }
 0x858   : > { %1471 = shalt.err (!%p1468_p7)
}
 0x859   : > { %s1533_s27 = smov 128   ;;  %s1534_s29 = smov 8  }
 0x85a   : > { %1221 = dma.vmem_to_hbm [thread:$0]  (%p1724_p5), %s1844_s12, 256, %s1849_s30, %s938_s19, %s1533_s27, %s1533_s27, %s1534_s29  }
 0x85b PF: > { %s966_s25 = sand.u32 1, %s1506_s21   ;;  %p1921_p12 = scmp.ne.s32.totalorder %s1906_s28, 0 }
 0x85c   : > { %p1922_p1 = scmp.ge.s32.totalorder %s1518_s24, 2  ;;  %s967_s9 = scalar_lea.sflag [#allocation5], %s966_s25 }
 0x85e   : > { %p1238_p2 = pnand %p1922_p1, %p1921_p12 }
 0x860   : > { %1501 = dma.done.wait (!%p1238_p2), %s967_s9, 256  }
 0x861   : > { %1503 = vsyncadd (!%p1238_p2), %s967_s9, 4294967040  ;;  %p21_p4 = scmp.ge.s32.totalorder %s1710_s18, 4   ;;  %s1923_s21 = smov %s1510_s22 }
 0x862   : > { %s1924_s22 = smov %s1514_s23  ;;  %s1925_s23 = smov %s1720_s14 }
 0x863   : > { %s1926_s24 = smov %s1710_s18  ;;  %23 = sbr.rel (!%p21_p4) target bundleno = 7 (0x7), region = 102 }
 0x86a   :  { %972 = vsyncpa [#allocation4], 1 }
 0x86b   :  { %974 = vsyncpa [#allocation4 + $0x1], 1 }
 0x86c   :  { %975 = vsyncpa [#allocation7], 1 }
 0x86d   :  { %976 = vsyncpa [#allocation10], 1 }
 0x86e   :  { %977 = vsyncpa [#allocation5], 1 }
 0x86f   :  { %979 = vsyncpa [#allocation5 + $0x1], 1 }

</bundles_post_ra>
